<compile_context>
chip_gen: v5e
topology: v5e:2x2
jax: 0.10.0
libtpu: 0.0.40
codegen_flags: <defaults>
</compile_context>

<pallas_src>
import functools

import jax
import jax.numpy as jnp
from jax import lax
from jax.experimental import pallas as pl
from jax.experimental.pallas import tpu as pltpu

LANE = 128  # TPU vreg lane width


def _flash_head_kernel(xq_ref, xkv_ref, w_ref, o_ref,
                       q_sc, m_sc, l_sc, acc_sc, *, block_q, block_kv):
    # xq_ref : (bt, Tq, C)   x block for the query rows of this grid step
    # xkv_ref: (bt, Tkv, C)  x block for the key/value rows of this grid step
    # w_ref  : (C, 3*128)    fused, lane-padded [q*scale | k | v]
    # o_ref  : (bt, Tq, 128) lane-dense (padded) output block
    ki = pl.program_id(2)
    n_kv = pl.num_programs(2)
    mm_dt = w_ref.dtype                      # dtype fed to the MXU

    q_start = pl.program_id(1) * block_q
    kv_start = ki * block_kv

    @pl.when(ki == 0)
    def _init():
        # Project Q once per (batch-tile, q-tile); softmax scale is folded into W_q.
        q = lax.dot_general(
            xq_ref[...].astype(mm_dt), w_ref[:, :LANE],
            dimension_numbers=(((2,), (0,)), ((), ())),
            preferred_element_type=jnp.float32)
        q_sc[...] = q.astype(mm_dt)
        m_sc[...] = jnp.full_like(m_sc, -jnp.inf)
        l_sc[...] = jnp.zeros_like(l_sc)
        acc_sc[...] = jnp.zeros_like(acc_sc)

    # Causal skip: this KV tile lies entirely above the diagonal -> contributes nothing.
    @pl.when(kv_start <= q_start + block_q - 1)
    def _update():
        x_kv = xkv_ref[...].astype(mm_dt)
        k = lax.dot_general(
            x_kv, w_ref[:, LANE:2 * LANE],
            dimension_numbers=(((2,), (0,)), ((), ())),
            preferred_element_type=jnp.float32).astype(mm_dt)
        v = lax.dot_general(
            x_kv, w_ref[:, 2 * LANE:],
            dimension_numbers=(((2,), (0,)), ((), ())),
            preferred_element_type=jnp.float32).astype(mm_dt)

        # Scores: contract the (lane-padded) feature dim of both q and k (no explicit k.T).
        # Padded columns are zero in both operands, so the result is unchanged.
        s = lax.dot_general(
            q_sc[...], k,
            dimension_numbers=(((2,), (2,)), ((0,), (0,))),
            preferred_element_type=jnp.float32)               # (bt, Tq, Tkv), f32

        # Causal mask built once as a 2-D (Tq, Tkv) compare, broadcast across batch.
        row = lax.broadcasted_iota(jnp.int32, (block_q, block_kv), 0) + q_start
        col = lax.broadcasted_iota(jnp.int32, (block_q, block_kv), 1) + kv_start
        s = jnp.where((col <= row)[None, :, :], s, -jnp.inf)

        # Online (flash) softmax update.
        m_prev = m_sc[...]
        m_new = jnp.maximum(m_prev, s.max(axis=-1, keepdims=True))
        alpha = jnp.exp(m_prev - m_new)
        p = jnp.exp(s - m_new)
        l_sc[...] = alpha * l_sc[...] + p.sum(axis=-1, keepdims=True)
        acc_sc[...] = alpha * acc_sc[...] + lax.dot_general(
            p.astype(mm_dt), v,
            dimension_numbers=(((2,), (1,)), ((0,), (0,))),
            preferred_element_type=jnp.float32)
        m_sc[...] = m_new

    @pl.when(ki == n_kv - 1)
    def _finalize():
        inv_l = pl.reciprocal(l_sc[...], approx=True)          # EUP slot, off the VALU
        o_ref[...] = (acc_sc[...] * inv_l).astype(o_ref.dtype)


def _pick_seq_tile(T, cap=128):
    """Largest divisor of T that is a multiple of 8 and <= cap; else full T."""
    best = None
    for d in range(8, min(cap, T) + 1, 8):
        if T % d == 0:
            best = d
    return best if best is not None else T


def _footprint(bt, tq, tkv, C, itemsize):
    """Rough per-grid-step live VMEM bytes (blocks double-buffered + scratch + temps)."""
    f32 = 4
    return int(
        2 * bt * tq * C * itemsize            # xq block (double-buffered)
        + 2 * bt * tkv * C * itemsize         # xkv block (double-buffered)
        + 2 * C * 3 * LANE * itemsize         # fused padded weights (double-buffered)
        + 2 * bt * tq * LANE * itemsize       # output block (double-buffered)
        + bt * tq * LANE * itemsize           # q scratch
        + bt * tq * LANE * f32                # accumulator scratch
        + 2 * bt * tq * LANE * f32            # m / l scratch (lane-padded)
        + 2 * bt * tkv * LANE * (f32 + itemsize)   # k, v (f32 accum + cast copy)
        + 3 * bt * tq * tkv * f32             # scores, probs (+ cast)
        + bt * tq * LANE * f32                # slack for misc temporaries
    )


def _vmem_budget_bytes():
    try:
        cap = getattr(pltpu.get_tpu_info(), "vmem_capacity_bytes", None)
        if cap:
            return int(cap * 0.8)
    except Exception:
        pass
    return int((64 << 20) * 0.8)              # conservative (v7x-sized) fallback


def _pick_block_batch(B, T, tq, tkv, C, itemsize, budget):
    """Largest divisor of B fitting the VMEM budget; prefer >=4 (else >=2) grid steps."""
    n_seq_steps = (T // tq) * (T // tkv)
    max_steps = B * n_seq_steps
    min_steps = 4 if max_steps >= 4 else (2 if max_steps >= 2 else 1)
    best = 1
    for bt in range(1, B + 1):
        if B % bt:
            continue
        if (B // bt) * n_seq_steps < min_steps:
            continue
        if _footprint(bt, tq, tkv, C, itemsize) > budget:
            continue
        best = bt
    return best


def self_attention_head(x, w_query, w_key, w_value, *,
                        block_batch=None, block_q=None, block_kv=None,
                        matmul_dtype=None):
    """x: (B, T, C); w_*: (H, C) PyTorch-style Linear weights (no bias). Returns (B, T, H)."""
    B, T, C = x.shape
    H = w_query.shape[0]
    assert H <= LANE, "head_size > 128 not supported"  # TODO(synk): multi-lane-tile values
    scale = float(H) ** -0.5
    mm_dt = jnp.dtype(matmul_dtype) if matmul_dtype is not None else jnp.dtype(x.dtype)

    def to_padded(w, s=1.0):
        wt = (w.astype(jnp.float32).T * s).astype(mm_dt)       # (C, H), PyTorch x @ W.T
        return jnp.pad(wt, ((0, 0), (0, LANE - H)))            # (C, 128), zero-padded lanes

    # Fused, lane-padded projection weights: q at lane 0, k at 128, v at 256.
    w_qkv = jnp.concatenate(
        [to_padded(w_query, scale), to_padded(w_key), to_padded(w_value)], axis=1)

    tq = block_q if block_q is not None else _pick_seq_tile(T)
    tkv = block_kv if block_kv is not None else _pick_seq_tile(T)
    assert T % tq == 0 and T % tkv == 0, "block_q / block_kv must divide T"

    itemsize = jnp.dtype(x.dtype).itemsize
    budget = _vmem_budget_bytes()
    bt = block_batch if block_batch is not None else _pick_block_batch(
        B, T, tq, tkv, C, itemsize, budget)
    assert B % bt == 0, "block_batch must divide B"

    grid = (B // bt, T // tq, T // tkv)
    kernel = functools.partial(_flash_head_kernel, block_q=tq, block_kv=tkv)

    cp_kwargs = dict(dimension_semantics=("parallel", "parallel", "arbitrary"))
    est = _footprint(bt, tq, tkv, C, itemsize)
    if est > (12 << 20):
        # Only raise the scoped limit when it matters; budget is ~0.8 * physical VMEM.
        cp_kwargs["vmem_limit_bytes"] = budget

    out_padded = pl.pallas_call(
        kernel,
        out_shape=jax.ShapeDtypeStruct((B, T, LANE), x.dtype),
        grid_spec=pltpu.PrefetchScalarGridSpec(
            num_scalar_prefetch=0,
            grid=grid,
            in_specs=[
                pl.BlockSpec((bt, tq, C), lambda b, qi, ki: (b, qi, 0)),   # x for Q rows
                pl.BlockSpec((bt, tkv, C), lambda b, qi, ki: (b, ki, 0)),  # x for K/V rows
                pl.BlockSpec((C, 3 * LANE), lambda b, qi, ki: (0, 0)),     # fused weights
            ],
            out_specs=pl.BlockSpec((bt, tq, LANE), lambda b, qi, ki: (b, qi, 0)),
            scratch_shapes=[
                pltpu.VMEM((bt, tq, LANE), mm_dt),        # q tile
                pltpu.VMEM((bt, tq, 1), jnp.float32),     # running max m
                pltpu.VMEM((bt, tq, 1), jnp.float32),     # running sum l
                pltpu.VMEM((bt, tq, LANE), jnp.float32),  # output accumulator
            ],
        ),
        compiler_params=pltpu.CompilerParams(**cp_kwargs),
    )(x, x, w_qkv)

    return out_padded[:, :, :H]


def _reference(x, w_query, w_key, w_value):
    """Plain-JAX reference mirroring the PyTorch training-mode forward."""
    H = w_query.shape[0]
    q = x @ w_query.T
    k = x @ w_key.T
    v = x @ w_value.T
    s = (q @ jnp.swapaxes(k, -1, -2)) * (float(H) ** -0.5)
    T = x.shape[1]
    tril = jnp.tril(jnp.ones((T, T)))
    s = jnp.where(tril == 0, -jnp.inf, s)
    w = jax.nn.softmax(s, axis=-1)
    return w @ v


if __name__ == "__main__":
    # Small synthetic config: batch=2, block_size(seq)=8, n_embedding=32, head_size=16.
    B, T, C, H = 2, 8, 32, 16

    key = jax.random.PRNGKey(0)
    kx, kq, kk, kv = jax.random.split(key, 4)

    x = jax.random.normal(kx, (B, T, C), dtype=jnp.float32)
    # Deterministic parameter init (PyTorch Linear weight shape: (out, in)).
    w_query = jax.random.normal(kq, (H, C), dtype=jnp.float32) * (C ** -0.5)
    w_key = jax.random.normal(kk, (H, C), dtype=jnp.float32) * (C ** -0.5)
    w_value = jax.random.normal(kv, (H, C), dtype=jnp.float32) * (C ** -0.5)

    out = self_attention_head(x, w_query, w_key, w_value)
    out = jax.block_until_ready(out)

    ref = _reference(x, w_query, w_key, w_value)
    assert out.shape == (B, T, H)
    # Slight tolerance: softmax denominator uses the EUP approximate reciprocal
    # (relative error ~2^-12), well below attention noise floor.
    assert jnp.allclose(out, ref, atol=2e-3, rtol=2e-3)

    print("KERNEL_OK")
</pallas_src>

<mosaic_0001>
module attributes {stable_mosaic.version = 11 : i64} {
  func.func @_flash_head_kernel(%arg0: i32, %arg1: i32, %arg2: i32, %arg3: memref<1x8x32xf32, #tpu.memory_space<vmem>>, %arg4: memref<1x8x32xf32, #tpu.memory_space<vmem>>, %arg5: memref<32x384xf32, #tpu.memory_space<vmem>>, %arg6: memref<1x8x128xf32, #tpu.memory_space<vmem>>, %arg7: memref<1x8x128xf32, #tpu.memory_space<vmem>>, %arg8: memref<1x8x1xf32, #tpu.memory_space<vmem>>, %arg9: memref<1x8x1xf32, #tpu.memory_space<vmem>>, %arg10: memref<1x8x128xf32, #tpu.memory_space<vmem>>) attributes {dimension_semantics = [#tpu.dimension_semantics<parallel>, #tpu.dimension_semantics<parallel>, #tpu.dimension_semantics<arbitrary>], iteration_bounds = array<i64: 2, 1, 1>, scalar_prefetch = 0 : i64, scratch_operands = 4 : i64, tpu.core_type = #tpu.core_type<tc>, window_params = [{transform_indices = @transform_0, window_bounds = array<i64: 1, 8, 32>}, {transform_indices = @transform_1, window_bounds = array<i64: 1, 8, 32>}, {pipeline_mode = #tpu.pipeline_mode<synchronous>, transform_indices = @transform_2, window_bounds = array<i64: 32, 384>}, {transform_indices = @transform_3, window_bounds = array<i64: 1, 8, 128>}]} {
    %c8_i32 = arith.constant 8 : i32
    %0 = arith.muli %arg1, %c8_i32 : i32
    %c8_i32_0 = arith.constant 8 : i32
    %1 = arith.muli %arg2, %c8_i32_0 : i32
    %c0_i32 = arith.constant 0 : i32
    %2 = arith.cmpi eq, %arg2, %c0_i32 : i32
    %3 = arith.extui %2 : i1 to i32
    %c0_i32_1 = arith.constant 0 : i32
    %4 = arith.cmpi ne, %3, %c0_i32_1 : i32
    scf.if %4 {
      %c0 = arith.constant 0 : index
      %c0_6 = arith.constant 0 : index
      %c0_7 = arith.constant 0 : index
      %13 = vector.load %arg3[%c0, %c0_6, %c0_7] : memref<1x8x32xf32, #tpu.memory_space<vmem>>, vector<1x8x32xf32>
      %c0_8 = arith.constant 0 : index
      %c0_9 = arith.constant 0 : index
      %14 = vector.load %arg5[%c0_8, %c0_9] : memref<32x384xf32, #tpu.memory_space<vmem>>, vector<32x128xf32>
      %cst = arith.constant dense<0.000000e+00> : vector<1x8x128xf32>
      %15 = tpu.matmul %13, %14, %cst {dimension_numbers = #tpu.dot_dimension_numbers<[2], [0], [0, 1], [1], [0, 0, 0, 1, 1, 1], [], []>} : vector<1x8x32xf32>, vector<32x128xf32>, vector<1x8x128xf32> -> vector<1x8x128xf32>
      %c0_10 = arith.constant 0 : index
      %c0_11 = arith.constant 0 : index
      %c0_12 = arith.constant 0 : index
      %16 = vector.load %arg7[%c0_10, %c0_11, %c0_12] : memref<1x8x128xf32, #tpu.memory_space<vmem>>, vector<1x8x128xf32>
      tpu.vector_store %arg7[%c0_10, %c0_11, %c0_12], %15 {strides = array<i32>} : memref<1x8x128xf32, #tpu.memory_space<vmem>>, vector<1x8x128xf32>,
      %cst_13 = arith.constant 0xFF800000 : f32
      %17 = vector.broadcast %cst_13 : f32 to vector<1x8x1xf32>
      %c0_14 = arith.constant 0 : index
      %c0_15 = arith.constant 0 : index
      %c0_16 = arith.constant 0 : index
      %18 = vector.load %arg8[%c0_14, %c0_15, %c0_16] : memref<1x8x1xf32, #tpu.memory_space<vmem>>, vector<1x8x1xf32>
      tpu.vector_store %arg8[%c0_14, %c0_15, %c0_16], %17 {strides = array<i32>} : memref<1x8x1xf32, #tpu.memory_space<vmem>>, vector<1x8x1xf32>,
      %cst_17 = arith.constant 0.000000e+00 : f32
      %19 = vector.broadcast %cst_17 : f32 to vector<1x8x1xf32>
      %c0_18 = arith.constant 0 : index
      %c0_19 = arith.constant 0 : index
      %c0_20 = arith.constant 0 : index
      %20 = vector.load %arg9[%c0_18, %c0_19, %c0_20] : memref<1x8x1xf32, #tpu.memory_space<vmem>>, vector<1x8x1xf32>
      tpu.vector_store %arg9[%c0_18, %c0_19, %c0_20], %19 {strides = array<i32>} : memref<1x8x1xf32, #tpu.memory_space<vmem>>, vector<1x8x1xf32>,
      %cst_21 = arith.constant 0.000000e+00 : f32
      %21 = vector.broadcast %cst_21 : f32 to vector<1x8x128xf32>
      %c0_22 = arith.constant 0 : index
      %c0_23 = arith.constant 0 : index
      %c0_24 = arith.constant 0 : index
      %22 = vector.load %arg10[%c0_22, %c0_23, %c0_24] : memref<1x8x128xf32, #tpu.memory_space<vmem>>, vector<1x8x128xf32>
      tpu.vector_store %arg10[%c0_22, %c0_23, %c0_24], %21 {strides = array<i32>} : memref<1x8x128xf32, #tpu.memory_space<vmem>>, vector<1x8x128xf32>,
    } else {
    }
    %c8_i32_2 = arith.constant 8 : i32
    %5 = arith.addi %0, %c8_i32_2 : i32
    %c1_i32 = arith.constant 1 : i32
    %6 = arith.subi %5, %c1_i32 : i32
    %7 = arith.cmpi sle, %1, %6 : i32
    %8 = arith.extui %7 : i1 to i32
    %c0_i32_3 = arith.constant 0 : i32
    %9 = arith.cmpi ne, %8, %c0_i32_3 : i32
    scf.if %9 {
      %c0 = arith.constant 0 : index
      %c0_6 = arith.constant 0 : index
      %c0_7 = arith.constant 0 : index
      %13 = vector.load %arg4[%c0, %c0_6, %c0_7] : memref<1x8x32xf32, #tpu.memory_space<vmem>>, vector<1x8x32xf32>
      %c0_8 = arith.constant 0 : index
      %c128 = arith.constant 128 : index
      %14 = vector.load %arg5[%c0_8, %c128] : memref<32x384xf32, #tpu.memory_space<vmem>>, vector<32x128xf32>
      %cst = arith.constant dense<0.000000e+00> : vector<1x8x128xf32>
      %15 = tpu.matmul %13, %14, %cst {dimension_numbers = #tpu.dot_dimension_numbers<[2], [0], [0, 1], [1], [0, 0, 0, 1, 1, 1], [], []>} : vector<1x8x32xf32>, vector<32x128xf32>, vector<1x8x128xf32> -> vector<1x8x128xf32>
      %c0_9 = arith.constant 0 : index
      %c256 = arith.constant 256 : index
      %16 = vector.load %arg5[%c0_9, %c256] : memref<32x384xf32, #tpu.memory_space<vmem>>, vector<32x128xf32>
      %cst_10 = arith.constant dense<0.000000e+00> : vector<1x8x128xf32>
      %17 = tpu.matmul %13, %16, %cst_10 {dimension_numbers = #tpu.dot_dimension_numbers<[2], [0], [0, 1], [1], [0, 0, 0, 1, 1, 1], [], []>} : vector<1x8x32xf32>, vector<32x128xf32>, vector<1x8x128xf32> -> vector<1x8x128xf32>
      %c0_11 = arith.constant 0 : index
      %c0_12 = arith.constant 0 : index
      %c0_13 = arith.constant 0 : index
      %18 = vector.load %arg7[%c0_11, %c0_12, %c0_13] : memref<1x8x128xf32, #tpu.memory_space<vmem>>, vector<1x8x128xf32>
      %cst_14 = arith.constant dense<0.000000e+00> : vector<1x8x8xf32>
      %19 = tpu.matmul %18, %15, %cst_14 {dimension_numbers = #tpu.dot_dimension_numbers<[2], [2], [1], [1], [0, 0, 0, 1, 1, 1], [0], [0]>} : vector<1x8x128xf32>, vector<1x8x128xf32>, vector<1x8x8xf32> -> vector<1x8x8xf32>
      %20 = tpu.iota {dimensions = array<i32: 0>} : vector<8x8xi32>
      %21 = vector.broadcast %0 : i32 to vector<8x8xi32>
      %22 = arith.addi %20, %21 : vector<8x8xi32>
      %23 = tpu.iota {dimensions = array<i32: 1>} : vector<8x8xi32>
      %24 = vector.broadcast %1 : i32 to vector<8x8xi32>
      %25 = arith.addi %23, %24 : vector<8x8xi32>
      %26 = arith.cmpi sle, %25, %22 : vector<8x8xi32>
      %27 = vector.shape_cast %26 : vector<8x8xi1> to vector<1x8x8xi1>
      %cst_15 = arith.constant 0xFF800000 : f32
      %28 = vector.broadcast %cst_15 : f32 to vector<1x8x8xf32>
      %29 = arith.select %27, %19, %28 : vector<1x8x8xi1>, vector<1x8x8xf32>
      %c0_16 = arith.constant 0 : index
      %c0_17 = arith.constant 0 : index
      %c0_18 = arith.constant 0 : index
      %30 = vector.load %arg8[%c0_16, %c0_17, %c0_18] : memref<1x8x1xf32, #tpu.memory_space<vmem>>, vector<1x8x1xf32>
      %cst_19 = arith.constant dense<0xFF800000> : vector<1x8xf32>
      %31 = vector.multi_reduction <maximumf>, %29, %cst_19 [2] : vector<1x8x8xf32> to vector<1x8xf32>
      %32 = vector.shape_cast %31 : vector<1x8xf32> to vector<1x8x1xf32>
      %33 = arith.maximumf %30, %32 : vector<1x8x1xf32>
      %34 = arith.subf %30, %33 : vector<1x8x1xf32>
      %35 = math.exp %34 : vector<1x8x1xf32>
      %36 = vector.broadcast %33 : vector<1x8x1xf32> to vector<1x8x8xf32>
      %37 = arith.subf %29, %36 : vector<1x8x8xf32>
      %38 = math.exp %37 : vector<1x8x8xf32>
      %c0_20 = arith.constant 0 : index
      %c0_21 = arith.constant 0 : index
      %c0_22 = arith.constant 0 : index
      %39 = vector.load %arg9[%c0_20, %c0_21, %c0_22] : memref<1x8x1xf32, #tpu.memory_space<vmem>>, vector<1x8x1xf32>
      %40 = arith.mulf %35, %39 : vector<1x8x1xf32>
      %cst_23 = arith.constant dense<0.000000e+00> : vector<1x8xf32>
      %41 = vector.multi_reduction <add>, %38, %cst_23 [2] : vector<1x8x8xf32> to vector<1x8xf32>
      %42 = vector.shape_cast %41 : vector<1x8xf32> to vector<1x8x1xf32>
      %43 = arith.addf %40, %42 : vector<1x8x1xf32>
      %c0_24 = arith.constant 0 : index
      %c0_25 = arith.constant 0 : index
      %c0_26 = arith.constant 0 : index
      %44 = vector.load %arg9[%c0_24, %c0_25, %c0_26] : memref<1x8x1xf32, #tpu.memory_space<vmem>>, vector<1x8x1xf32>
      tpu.vector_store %arg9[%c0_24, %c0_25, %c0_26], %43 {strides = array<i32>} : memref<1x8x1xf32, #tpu.memory_space<vmem>>, vector<1x8x1xf32>,
      %c0_27 = arith.constant 0 : index
      %c0_28 = arith.constant 0 : index
      %c0_29 = arith.constant 0 : index
      %45 = vector.load %arg10[%c0_27, %c0_28, %c0_29] : memref<1x8x128xf32, #tpu.memory_space<vmem>>, vector<1x8x128xf32>
      %46 = vector.broadcast %35 : vector<1x8x1xf32> to vector<1x8x128xf32>
      %47 = arith.mulf %46, %45 : vector<1x8x128xf32>
      %cst_30 = arith.constant dense<0.000000e+00> : vector<1x8x128xf32>
      %48 = tpu.matmul %38, %17, %cst_30 {dimension_numbers = #tpu.dot_dimension_numbers<[2], [1], [1], [2], [0, 0, 0, 1, 1, 2], [0], [0]>} : vector<1x8x8xf32>, vector<1x8x128xf32>, vector<1x8x128xf32> -> vector<1x8x128xf32>
      %49 = arith.addf %47, %48 : vector<1x8x128xf32>
      %c0_31 = arith.constant 0 : index
      %c0_32 = arith.constant 0 : index
      %c0_33 = arith.constant 0 : index
      %50 = vector.load %arg10[%c0_31, %c0_32, %c0_33] : memref<1x8x128xf32, #tpu.memory_space<vmem>>, vector<1x8x128xf32>
      tpu.vector_store %arg10[%c0_31, %c0_32, %c0_33], %49 {strides = array<i32>} : memref<1x8x128xf32, #tpu.memory_space<vmem>>, vector<1x8x128xf32>,
      %c0_34 = arith.constant 0 : index
      %c0_35 = arith.constant 0 : index
      %c0_36 = arith.constant 0 : index
      %51 = vector.load %arg8[%c0_34, %c0_35, %c0_36] : memref<1x8x1xf32, #tpu.memory_space<vmem>>, vector<1x8x1xf32>
      tpu.vector_store %arg8[%c0_34, %c0_35, %c0_36], %33 {strides = array<i32>} : memref<1x8x1xf32, #tpu.memory_space<vmem>>, vector<1x8x1xf32>,
    } else {
    }
    %c0_i32_4 = arith.constant 0 : i32
    %10 = arith.cmpi eq, %arg2, %c0_i32_4 : i32
    %11 = arith.extui %10 : i1 to i32
    %c0_i32_5 = arith.constant 0 : i32
    %12 = arith.cmpi ne, %11, %c0_i32_5 : i32
    scf.if %12 {
      %c0 = arith.constant 0 : index
      %c0_6 = arith.constant 0 : index
      %c0_7 = arith.constant 0 : index
      %13 = vector.load %arg9[%c0, %c0_6, %c0_7] : memref<1x8x1xf32, #tpu.memory_space<vmem>>, vector<1x8x1xf32>
      %14 = tpu.reciprocal %13 {approx = true} : vector<1x8x1xf32> -> vector<1x8x1xf32>
      %c0_8 = arith.constant 0 : index
      %c0_9 = arith.constant 0 : index
      %c0_10 = arith.constant 0 : index
      %15 = vector.load %arg10[%c0_8, %c0_9, %c0_10] : memref<1x8x128xf32, #tpu.memory_space<vmem>>, vector<1x8x128xf32>
      %16 = vector.broadcast %14 : vector<1x8x1xf32> to vector<1x8x128xf32>
      %17 = arith.mulf %15, %16 : vector<1x8x128xf32>
      %c0_11 = arith.constant 0 : index
      %c0_12 = arith.constant 0 : index
      %c0_13 = arith.constant 0 : index
      %18 = vector.load %arg6[%c0_11, %c0_12, %c0_13] : memref<1x8x128xf32, #tpu.memory_space<vmem>>, vector<1x8x128xf32>
      tpu.vector_store %arg6[%c0_11, %c0_12, %c0_13], %17 {strides = array<i32>} : memref<1x8x128xf32, #tpu.memory_space<vmem>>, vector<1x8x128xf32>,
    } else {
    }
    return
  }
  func.func @transform_0(%arg0: i32, %arg1: i32, %arg2: i32) -> (i32, i32, i32) {
    %c0_i32 = arith.constant 0 : i32
    %c0_i32_0 = arith.constant 0 : i32
    return %arg0, %arg1, %c0_i32 : i32, i32, i32
  }
  func.func @transform_1(%arg0: i32, %arg1: i32, %arg2: i32) -> (i32, i32, i32) {
    %c0_i32 = arith.constant 0 : i32
    %c0_i32_0 = arith.constant 0 : i32
    return %arg0, %arg2, %c0_i32 : i32, i32, i32
  }
  func.func @transform_2(%arg0: i32, %arg1: i32, %arg2: i32) -> (i32, i32) {
    %c0_i32 = arith.constant 0 : i32
    %c0_i32_0 = arith.constant 0 : i32
    %c0_i32_1 = arith.constant 0 : i32
    return %c0_i32, %c0_i32_0 : i32, i32
  }
  func.func @transform_3(%arg0: i32, %arg1: i32, %arg2: i32) -> (i32, i32, i32) {
    %c0_i32 = arith.constant 0 : i32
    %c0_i32_0 = arith.constant 0 : i32
    return %arg0, %arg1, %c0_i32 : i32, i32, i32
  }
}

</mosaic_0001>

<bundles_post_ra>
// kernel: tpu_custom_call.1
= control target key start
LH: loop header
LB: loop body
LE: loop exit
PB: predicated region body
PF: predicated region fallthrough
CT: control target
= control target key end

     0   :  { %s1092_s0 = inlined_call_operand.hbm [shape: f32[2,8,32], index: 0, kind: input, shape index: {}]   ;;  %s1093_s1 = inlined_call_operand.hbm [shape: f32[2,8,32], index: 1, kind: input, shape index: {}]   ;;  %s1094_s2 = inlined_call_operand.hbm [shape: f32[32,384], index: 2, kind: input, shape index: {}]   ;;  %s1095_s3 = inlined_call_operand.hbm [shape: f32[2,8,128], index: 3, kind: output, shape index: {}]  }
   0x1   :  { %1098 = sst [smem:[#allocation20_spill]] %s1094_s2 }
   0x2   :  { %8 = vsyncpa [#allocation7], 0 }
   0x3   :  { %10 = vsyncpa [#allocation7 + $0x1], 0 }
   0x4   :  { %11 = vsyncpa [#allocation10], 0 }
   0x5   :  { %13 = vsyncpa [#allocation10 + $0x1], 0 }
   0x6   :  { %14 = vsyncpa [#allocation8], 0 }
   0x7   :  { %16 = vsyncpa [#allocation8 + $0x1], 0  ;;  %s925_s12 = smov 0   ;;  %s927_s13 = smov 0  }
   0x8   :  { %s929_s14 = smov 0   ;;  %s931_s15 = smov 0  }
   0x9   :  { %s933_s16 = smov 0   ;;  %s935_s17 = smov 0  }
   0xa LB: > { %1099 = sst [smem:[#allocation17_spill]] %s893_s16  ;;  %s956_s18 = sadd.s32 4294967295, %s897_s17   ;;  %s897_s17 = sphi %s935_s17, %s22_s17   ;;  %s893_s16 = sphi %s933_s16, %s1110_s16   ;;  %s889_s15 = sphi %s931_s15, %s1109_s15   ;;  %s885_s14 = sphi %s929_s14, %s1113_s14   ;;  %s881_s13 = sphi %s927_s13, %s1112_s13   ;;  %s877_s12 = sphi %s925_s12, %s1111_s12  }
   0xb   : > { %p605_p0 = scmp.ge.s32.totalorder %s897_s17, 1  ;;  %p64_p1 = scmp.eq.s32.totalorder %s956_s18, 0 }
   0xc   : > { %p151_p2 = scmp.lt.s32.totalorder %s897_s17, 3  ;;  %s1100_s2 = sld [smem:[#allocation20_spill]] }
   0xd   : > { %s899_s23 = smov [#allocation11]   ;;  %p607_p6 = scmp.ge.s32.totalorder %s897_s17, 2 }
   0xe   : > { %p964_p3 = pnand %p605_p0, %p151_p2  ;;  %s164_s24 = sshll.u32 %s899_s23, 4  ;;  %s165_s24 = int_to_ptr.vmem [resolvable:$true] %s164_s24 }
   0xf   : > { %s900_s25 = smov 384   ;;  %s901_s26 = smov 24  }
  0x10   : > { %p635_p4 = pneg %p964_p3  ;;  %s604_s27 = sadd.s32 4294967294, %s897_s17  }
  0x11   : > { %s41_s28 = sadd.s32 1, %s893_s16  ;;  %s50_s29 = sadd.s32 1, %s885_s14 }
  0x12   : > { %s162_s21 = sshll.u32 %s1100_s2, 4  ;;  %p636_p5 = pnand %p635_p4, %p64_p1  ;;  %s163_s21 = int_to_ptr.hbm [resolvable:$true] %s162_s21 }
  0x13   : > { %p43_p7 = scmp.ge.s32.totalorder %s41_s28, 2  ;;  %p57_p8 = scmp.ne.s32.totalorder %s885_s14, %s881_s13 }
  0x14   : > { %638 = dma.hbm_to_vmem [thread:$0]  (!%p636_p5), %s163_s21, 1536, %s165_s24, [#allocation10], %s900_s25, %s900_s25, %s901_s26  }
  0x15   : > { %p58_p9 = scmp.eq.s32.totalorder %s897_s17, 0  ;;  %p63_p10 = scmp.ne.s32.totalorder %s881_s13, %s877_s12 }
  0x16   : > { %s1115_s28 = smov (%p43_p7, %s41_s28), 0  ;;  %p138_p13 = scmp.eq.s32.totalorder %s956_s18, 1 }
  0x17   : > { %1102 = sst [smem:[#allocation18_spill]] %s1115_s28  ;;  %p983_p11 = por %p58_p9, %p57_p8 }
  0x18   : > { %p989_p12 = por %p64_p1, %p63_p10  ;;  %s45_s5 = ssub.s32 %s893_s16, %s1115_s28 }
  0x19   : > { %p48_p0 = scmp.eq.s32.totalorder %s45_s5, 0  ;;  %p144_p2 = scmp.eq.s32.totalorder %s604_s27, 1 }
  0x1a   : > { %p996_p4 = por %p138_p13, %p57_p8  ;;  %p651_p5 = scmp.lt.s32.totalorder %s897_s17, 2 }
  0x1b   : > { %s1002_s7 = scalar_select %p48_p0, %s885_s14, %s50_s29  }
  0x1c   : > { %p1004_p7 = por %p144_p2, %p63_p10  ;;  %s178_s9 = sand.u32 1, %s885_s14  }
  0x1d   : > { %1106 = sst [smem:[#allocation19_spill]] %s1002_s7  ;;  %s608_s10 = sshll.u32 %s178_s9, 3 }
  0x1e   : > { %s609_s11 = sshll.u32 %s893_s16, 3  ;;  %s182_s23 = scalar_lea.vmem [#allocation6], %s608_s10 }
  0x1f   : > { %s187_s21 = scalar_lea.hbm %s1092_s0, %s609_s11  ;;  %s191_s24 = sshll.u32 %s182_s23, 4  ;;  %s192_s24 = int_to_ptr.vmem [resolvable:$true] %s191_s24 }
  0x20   : > { %s189_s25 = sshll.u32 %s187_s21, 4  ;;  %p640_p8 = pnand %p651_p5, %p983_p11  ;;  %s190_s25 = int_to_ptr.hbm [resolvable:$true] %s189_s25 }
  0x21   : > { %s207_s29 = scalar_lea.hbm %s1093_s1, %s609_s11  ;;  %s198_s5 = sand.u32 1, %s897_s17  }
  0x22   : > { %s179_s2 = scalar_lea.sflag [#allocation7], %s178_s9  ;;  %s209_s28 = sshll.u32 %s207_s29, 4  ;;  %s210_s28 = int_to_ptr.hbm [resolvable:$true] %s209_s28 }
  0x23   : > { %642 = dma.hbm_to_vmem [thread:$0]  (!%p640_p8), %s190_s25, 128, %s192_s24, %s179_s2  }
  0x24   : > { %s202_s16 = scalar_lea.vmem [#allocation9], %s608_s10  ;;  %s199_s19 = scalar_lea.sflag [#allocation10], %s198_s5 }
  0x25   : > { %s211_s7 = sshll.u32 %s202_s16, 4  ;;  %220 = sbr.rel (%p964_p3) target bundleno = 793 (0x319), region = 32  ;;  %s212_s7 = int_to_ptr.vmem [resolvable:$true] %s211_s7 }
  0x26   : > { %645 = dma.hbm_to_vmem [thread:$0]  (!%p640_p8), %s210_s28, 128, %s212_s7, %s199_s19  }
  0x27   : > { %s1022_s30 = sand.u32 (!%p964_p3), 1, %s881_s13  }
  0x28   : > { %s1025_s11 = sshll.u32 (!%p964_p3), %s1022_s30, 3  ;;  %s223_s2 = scalar_lea.sflag (!%p964_p3), [#allocation7], %s1022_s30 }
  0x29   : > { %s226_s9 = scalar_lea.vmem (!%p964_p3), [#allocation6], %s1025_s11 }
  0x2a   : > { %860 = dma.done.wait (%p989_p12), %s223_s2, 128  }
  0x2b   : > { %862 = vsyncadd (%p989_p12), %s223_s2, 4294967168  ;;  %s232_s16 = sand.u32 1, %s956_s18   ;;  %s236_s28 = scalar_lea.vmem [#allocation9], %s1025_s11 }
  0x2c   : > { %s233_s22 = scalar_lea.sflag [#allocation10], %s232_s16 }
  0x2d   : > { %864 = dma.done.wait (%p989_p12), %s233_s22, 128  }
  0x2e   : > { %866 = vsyncadd (%p989_p12), %s233_s22, 4294967168 }
  0x2f   : > { %868 = dma.done.wait (%p64_p1), [#allocation10], 1536  }
  0x30   : > { %870 = vsyncadd (%p64_p1), [#allocation10], 4294965760  ;;  %v319_v0 = vld [vmem:[#allocation11 + $0x50] sm:$0xff]  ;;  %v318_v1 = vld [vmem:[#allocation11 + $0x38] sm:$0xff]  ;;  %vm281_vm0 = vcmask 261120   ;;  %vm306_vm1 = vcmask 7168   ;;  %v389_v17 = vlaneseq }
  0x31   : > { %v280_v2 = vld [vmem:[#allocation11 + $0x48] sm:$0xff]  ;;  %336 = vmatpush.msra.mxu1 %v319_v0  ;;  %v279_v3 = vld [vmem:[#allocation11 + $0x30] sm:$0xff]  ;;  %v317_v4 = vld [vmem:[#allocation11 + $0x20] sm:$0xff]  ;;  %v902_v14 = vmov -inf   ;;  %vm400_vm3 = vcmask 64512   ;;  %v903_v23 = vmov 0  }
  0x32   : > { %297 = vmatpush.msra.mxu0 %v280_v2  ;;  %v278_v5 = vld [vmem:[#allocation11 + $0x18] sm:$0xff]  ;;  %v316_v6 = vld [vmem:[#allocation11 + $0x8] sm:$0xff]  ;;  %v277_v7 = vld [vmem:[#allocation11] sm:$0xff]  ;;  %307 = vst.msk [vmem:[#allocation3] sm:$0xff] %vm306_vm1, %v902_v14  ;;  %v390_v18 = vshrl.u32 %v389_v17, 7  ;;  %v394_v19 = vand.u32 127, %v389_v17  ;;  %708 = vset.pattern.permute.xlu0 %v903_v23 }
  0x33   : > { %337 = vmatpush.msra.mxu1 %v318_v1  ;;  %v315_v8 = vld [vmem:[%s236_s28] sm:$0xff]  ;;  %v276_v9 = vld [vmem:[%s226_s9] sm:$0xff]  ;;  %709 = vset.pattern.permute.xlu1 %v903_v23  ;;  %v904_v24 = vmov 0.0   ;;  %s622_s18 = sshll.u32 %s889_s15, 3  ;;  %s269_s20 = scalar_lea.vmem [#allocation12], %s1025_s11 }
  0x34   : > { %298 = vmatpush.msra.mxu0 %v279_v3  ;;  %v347_v12 = vld [vmem:[#allocation11 + $0x58] sm:$0xff]  ;;  %v346_v13 = vld [vmem:[#allocation11 + $0x40] sm:$0xff]  ;;  %v345_v15 = vld [vmem:[#allocation11 + $0x28] sm:$0xff]  ;;  %vm397_vm2 = vcmp.le.s32.totalorder %v394_v19, %v390_v18  ;;  %710 = vset.pattern.permute.xlu2 %v903_v23  ;;  %308 = vst.msk [vmem:[#allocation4] sm:$0xff] %vm306_vm1, %v904_v24  ;;  %s482_s10 = scalar_lea.hbm %s1095_s3, %s622_s18  ;;  %s484_s21 = sshll.u32 %s269_s20, 4  ;;  %s485_s21 = int_to_ptr.vmem [resolvable:$true] %s484_s21 }
  0x35   : > { %338 = vmatpush.msra.mxu1 %v317_v4  ;;  %360 = vmatpush.msra.mxu2 %v347_v12  ;;  %v344_v16 = vld [vmem:[#allocation11 + $0x10] sm:$0xff]  ;;  %s486_s23 = sshll.u32 %s482_s10, 4  ;;  %s471_s24 = scalar_lea.sflag [#allocation8], %s1022_s30  ;;  %s487_s23 = int_to_ptr.hbm [resolvable:$true] %s486_s23 }
  0x36   : > { %299 = vmatpush.msra.mxu0 %v278_v5  ;;  %s821_s25 = sshra.s32 %s487_s23, 4  ;;  %s827_s29 = scalar_lea.hbm %s1095_s3, 16  ;;  %s822_s25 = int_to_ptr.hbm [resolvable:$true] %s821_s25 }
  0x37   : > { %339 = vmatpush.msra.mxu1 %v316_v6  ;;  %361 = vmatpush.msra.mxu2 %v346_v13  ;;  %s823_s15 = scalar_lea.hbm %s822_s25, 8  ;;  %p828_p10 = scmp.lt.s32.totalorder %s822_s25, %s1095_s3 }
  0x38   : > { %300 = vmatpush.msra.mxu0 %v277_v7  ;;  %618 = vmatmul.msk.f32.vlgmr.msra.gmra.mxu1 %vm281_vm0, %v315_v8  ;;  %p824_p1 = scmp.ne.s32.totalorder %s822_s25, %s823_s15  ;;  %p829_p11 = scmp.lt.s32.totalorder %s827_s29, %s823_s15 }
  0x39   : > { %617 = vmatmul.msk.f32.vlgmr.msra.gmra.mxu0 %vm281_vm0, %v276_v9  ;;  %362 = vmatpush.msra.mxu2 %v345_v15  ;;  %v399_v25 = vld [vmem:[#allocation3] sm:$0xff] }
  0x3a   : > { %p825_p3 = pnand %p824_p1, %p996_p4  ;;  %p830_p12 = por %p829_p11, %p828_p10 }
  0x3b   : > { %363 = vmatpush.msra.mxu2 %v344_v16  ;;  %v416_v37 = vld [vmem:[#allocation4] sm:$0xff] }
  0x3c   : > { %619 = vmatmul.msk.f32.vlgmr.msra.gmra.mxu2 %vm281_vm0, %v315_v8  ;;  %p826_p9 = pneg %p825_p3 }
  0x3e   : > { %p831_p13 = pnand %p830_p12, %p826_p9 }
  0xb5   : > { %v341_v10 = vpop.f32.mrf.mxu1 }
  0xb6   : > { %384 = vmatpush.xpose.msra.mxu3 %v341_v10  ;;  %v302_v11 = vpop.f32.mrf.mxu0 }
  0xb9   : > { %385 = vmatmul.f32.vlgmr.msra.gmra.mxu3 %v302_v11 }
  0xbf   : > { %v365_v29 = vpop.f32.mrf.mxu2 }
  0xc0   : > { %449 = vmatpush.msrb.mxu3 %v365_v29 }
 0x13c   : > { %v386_v20 = vpop.f32.mrf.mxu3 }
 0x13d   : > { %v398_v21 = vsel %vm397_vm2, %v386_v20, -inf }
 0x13e   : > { %v401_v22 = vsel %vm400_vm3, %v398_v21, -inf }
 0x13f   : > { %402 = vmax.xlane.f32.xlu0 %v401_v22 }
 0x1b2   : > { %v403_v26 = vpop.xlane.xlu0 %402 }
 0x1b3   : > { %v404_v27 = vmax.f32 %v399_v25, %v403_v26 }
 0x1b5   : > { %v405_v28 = vsub.f32 %v399_v25, %v404_v27  ;;  %456 = vst.msk [vmem:[#allocation3] sm:$0xff] %vm306_vm1, %v404_v27  ;;  %410 = vperm.xlu0 %708, %v404_v27  }
 0x1b7   : > { %v406_v35 = vmul.f32 1.442695, %v405_v28 }
 0x227   : > { %v411_v30 = vpop.permute.xlu0 %410 }
 0x228   : > { %v413_v31 = vsub.f32 %v398_v21, %v411_v30 }
 0x22a   : > { %v414_v32 = vmul.f32 1.442695, %v413_v31 }
 0x22c   : > { %711 = vpow2.f32 %v414_v32 }
 0x22d   : > { %713 = vpow2.f32 %v406_v35 }
 0x232   : > { %v712_v33 = vpop.eup %711 }
 0x233   : > { %620 = vmatmul.msk.f32.vlgmr.msrb.gmra.mxu3 %vm400_vm3, %v712_v33  ;;  %v418_v34 = vsel %vm400_vm3, %v712_v33, 0.0  ;;  %v714_v36 = vpop.eup %713 }
 0x234   : > { %419 = vadd.xlane.f32.xlu1 %v418_v34  ;;  %v417_v38 = vmul.f32 %v714_v36, %v416_v37 }
 0x24d   : > { %427 = vperm.xlu1 %709, %v714_v36  }
 0x2a7   : > { %v420_v39 = vpop.xlane.xlu1 %419 }
 0x2a8   : > { %v421_v40 = vadd.f32 %v420_v39, %v417_v38 }
 0x2aa   : > { %423 = vst.msk [vmem:[#allocation4] sm:$0xff] %vm306_vm1, %v421_v40 }
 0x2b1   : > { %v460_v41 = vld [vmem:[#allocation4] sm:$0xff] }
 0x2b2   : > { %715 = vrcp.f32 %v460_v41 }
 0x2b6   : > { %v451_v45 = vpop.f32.mrf.mxu3 }
 0x2b8   : > { %v716_v42 = vpop.eup %715 }
 0x2b9   : > { %465 = vperm.xlu2 %710, %v716_v42  }
 0x2bf   : > { %v428_v43 = vpop.permute.xlu1 %427 }
 0x2c0   : > { %v430_v44 = vmul.f32 0.0, %v428_v43 }
 0x2c2   : > { %v454_v46 = vadd.f32 %v451_v45, %v430_v44 }
 0x313   : > { %v466_v47 = vpop.permute.xlu2 %465 }
 0x314   : > { %v468_v48 = vmul.f32 %v466_v47, %v454_v46 }
 0x316   : > { %469 = vst [vmem:[%s269_s20] sm:$0xff] %v468_v48 }
 0x317   : > { %834 = shalt.err (!%p831_p13)
}
 0x318   : > { %633 = dma.vmem_to_hbm [thread:$0]  (%p996_p4), %s485_s21, 128, %s487_s23, %s471_s24  }
 0x319 PF: > { %s498_s30 = sand.u32 1, %s877_s12   ;;  %p647_p0 = pnand %p607_p6, %p1004_p7 }
 0x31a   : > { %s499_s11 = scalar_lea.sflag [#allocation8], %s498_s30 }
 0x31b   : > { %p648_p2 = pneg %p647_p0 }
 0x31d   : > { %872 = dma.done.wait (%p648_p2), %s499_s11, 128  }
 0x31e   : > { %874 = vsyncadd (%p648_p2), %s499_s11, 4294967168  ;;  %s22_s17 = sadd.s32 1, %s897_s17   ;;  %s1108_s2 = sld [smem:[#allocation19_spill]] }
 0x31f   : > { %p19_p5 = scmp.ge.s32.totalorder %s22_s17, 4   ;;  %s1109_s15 = sld [smem:[#allocation17_spill]] }
 0x320   : > { %s1110_s16 = sld [smem:[#allocation18_spill]]  ;;  %s1111_s12 = smov %s881_s13 }
 0x321   : > { %s1112_s13 = smov %s885_s14  ;;  %21 = sbr.rel (!%p19_p5) target bundleno = 10 (0xa), region = 106 }
 0x324   : > { %s1113_s14 = smov %s1108_s2 }
 0x326   :  { %505 = vsyncpa [#allocation7], 1 }
 0x327   :  { %507 = vsyncpa [#allocation7 + $0x1], 1 }
 0x328   :  { %508 = vsyncpa [#allocation10], 1 }
 0x329   :  { %510 = vsyncpa [#allocation10 + $0x1], 1 }
 0x32a   :  { %511 = vsyncpa [#allocation8], 1 }
 0x32b   :  { %513 = vsyncpa [#allocation8 + $0x1], 1 }

</bundles_post_ra>
